<compile_context>
chip_gen: v7x
topology: tpu7x:2x2x1
jax: 0.10.0
libtpu: 0.0.40
codegen_flags: <defaults>
</compile_context>

<pallas_src>
import jax
import jax.numpy as jnp
from jax import lax
from jax.experimental import pallas as pl
from jax.experimental.pallas import tpu as pltpu

_LANE = 128
_SUBLANE = 8


def _round_up(x, m):
    return (x + m - 1) // m * m


def _dropout_consts(dropout):
    """uint32 keep-threshold and inverted-dropout scale (trace-time constants)."""
    p = float(dropout)
    if p >= 1.0:
        return 2 ** 32 - 1, 0.0
    threshold = int(round(p * 4294967296.0))
    threshold = min(max(threshold, 1), 2 ** 32 - 1)
    scale = 1.0 / (1.0 - p)
    return threshold, scale


def _keep_mask(shape, row_off, col_off, seed_u32, threshold):
    """Stateless per-element keep mask (True = keep).

    Murmur3-style finalizer over (global row, global col, seed) using only plain jnp
    integer ops: lowers on TPU and in interpret mode, and is independent of tiling.
    TODO(synk): distribution-equivalent to torch F.dropout, not bit-identical RNG.
    """
    r = (lax.broadcasted_iota(jnp.int32, shape, 0) + row_off).astype(jnp.uint32)
    c = (lax.broadcasted_iota(jnp.int32, shape, 1) + col_off).astype(jnp.uint32)
    h = (r * jnp.uint32(0x9E3779B1) + c * jnp.uint32(0x85EBCA77)
         + seed_u32 * jnp.uint32(0xC2B2AE3D))
    h = h ^ (h >> 16)
    h = h * jnp.uint32(0x85EBCA6B)
    h = h ^ (h >> 13)
    h = h * jnp.uint32(0xC2B2AE35)
    h = h ^ (h >> 16)
    return h >= jnp.uint32(threshold)


# ----------------------------------------------------------------------------
# Small path: one block, grid=(1,). Whole x / W / b live in VMEM.
# ----------------------------------------------------------------------------
def _make_small_kernel(*, threshold, scale, compute_dtype):
    apply_dropout = threshold is not None

    def _compute(x_ref, w_ref, b_ref, o_ref, seed_ref):
        x = x_ref[...].astype(compute_dtype)          # per-tile cast (no wrapper pass)
        if apply_dropout:
            seed_u = seed_ref[0].astype(jnp.uint32)
            keep = _keep_mask(x.shape, 0, 0, seed_u, threshold)
            x = jnp.where(keep, x * jnp.asarray(scale, dtype=compute_dtype),
                          jnp.zeros_like(x))
        logits = jnp.dot(x, w_ref[...], preferred_element_type=jnp.float32)
        o_ref[...] = (logits + b_ref[...]).astype(o_ref.dtype)

    if apply_dropout:
        def kernel(seed_ref, x_ref, w_ref, b_ref, o_ref):
            _compute(x_ref, w_ref, b_ref, o_ref, seed_ref)
    else:
        def kernel(x_ref, w_ref, b_ref, o_ref):
            _compute(x_ref, w_ref, b_ref, o_ref, None)
    return kernel


# ----------------------------------------------------------------------------
# Tiled path: grid=(B/tm, D/tk), reduction axis last ("arbitrary").
# ----------------------------------------------------------------------------
def _make_tiled_kernel(*, threshold, scale, compute_dtype, tk, d_total,
                       w_resident, acc_in_out, mask_k):
    apply_dropout = threshold is not None

    def _step(x_ref, w_ref, b_ref, o_ref, acc_ref, seed_ref):
        i = pl.program_id(0)
        k = pl.program_id(1)
        nk = pl.num_programs(1)
        acc = o_ref if acc_in_out else acc_ref        # f32 accumulation either way

        @pl.when(k == 0)
        def _init():
            acc[...] = jnp.zeros_like(acc[...])

        x = x_ref[...].astype(compute_dtype)          # per-tile cast in-kernel
        tm = x.shape[0]

        if mask_k:
            # Zero the K-tail columns of the boundary tile (OOB block data is garbage).
            col = lax.broadcasted_iota(jnp.int32, x.shape, 1) + k * tk
            x = jnp.where(col < d_total, x, jnp.zeros_like(x))

        if apply_dropout:
            seed_u = seed_ref[0].astype(jnp.uint32)
            keep = _keep_mask(x.shape, i * tm, k * tk, seed_u, threshold)
            x = jnp.where(keep, x * jnp.asarray(scale, dtype=compute_dtype),
                          jnp.zeros_like(x))

        if w_resident:
            # Whole (D_pad, O_pad) weight is VMEM-resident; slice the current K chunk.
            # Start = k * tk is statically a multiple of tk (sublane aligned).
            w = w_ref[pl.ds(k * tk, tk), :]
        else:
            w = w_ref[...]

        acc[...] += jnp.dot(x, w, preferred_element_type=jnp.float32)

        @pl.when(k == nk - 1)
        def _finalize():
            o_ref[...] = (acc[...] + b_ref[...]).astype(o_ref.dtype)

    if apply_dropout and not acc_in_out:
        def kernel(seed_ref, x_ref, w_ref, b_ref, o_ref, acc_ref):
            _step(x_ref, w_ref, b_ref, o_ref, acc_ref, seed_ref)
    elif apply_dropout:
        def kernel(seed_ref, x_ref, w_ref, b_ref, o_ref):
            _step(x_ref, w_ref, b_ref, o_ref, None, seed_ref)
    elif not acc_in_out:
        def kernel(x_ref, w_ref, b_ref, o_ref, acc_ref):
            _step(x_ref, w_ref, b_ref, o_ref, acc_ref, None)
    else:
        def kernel(x_ref, w_ref, b_ref, o_ref):
            _step(x_ref, w_ref, b_ref, o_ref, None, None)
    return kernel


# ----------------------------------------------------------------------------
# Wrapper
# ----------------------------------------------------------------------------
def counts_model_forward(x, weight_t, bias, *, dropout=0.0, training=False, seed=0,
                         tm=512, tk=1024, compute_dtype=None):
    """Pallas implementation of CountsModel.forward.

    x:        (batch, input_size)
    weight_t: (input_size, output_size)   == torch weight (out, in) transposed
    bias:     (output_size,)
    compute_dtype: optionally jnp.bfloat16 (MXU/VPU math dtype; bias & accumulation
                   stay f32, output dtype stays x.dtype).
    """
    B, D = x.shape
    O = weight_t.shape[1]
    out_dtype = x.dtype

    apply_dropout = (float(dropout) != 0.0) and bool(training)
    threshold, scale = _dropout_consts(dropout) if apply_dropout else (None, None)

    cdt = jnp.dtype(compute_dtype) if compute_dtype is not None else jnp.dtype(x.dtype)

    # Only W / bias (tiny) are cast & padded in the wrapper. x is streamed untouched
    # (no extra HBM round trip) and cast / masked per tile inside the kernel.
    w = weight_t.astype(cdt)
    O_pad = _round_up(max(O, 1), _LANE)
    if O_pad != O:
        w = jnp.pad(w, ((0, 0), (0, O_pad - O)))
    b2d = jnp.pad(bias.astype(jnp.float32), (0, O_pad - O)).reshape(1, O_pad)

    # ---------------- small path: single block, grid=(1,) ----------------
    if B <= 512 and D <= 1024:
        kernel = _make_small_kernel(threshold=threshold, scale=scale, compute_dtype=cdt)
        out_shape = jax.ShapeDtypeStruct((B, O_pad), out_dtype)
        cparams = pltpu.CompilerParams(dimension_semantics=("arbitrary",))
        if apply_dropout:
            seed_arr = jnp.asarray([seed], dtype=jnp.int32)
            out = pl.pallas_call(
                kernel, out_shape=out_shape,
                grid_spec=pltpu.PrefetchScalarGridSpec(
                    num_scalar_prefetch=1, grid=(1,),
                    in_specs=[pl.BlockSpec((B, D), lambda i, s: (0, 0)),
                              pl.BlockSpec((D, O_pad), lambda i, s: (0, 0)),
                              pl.BlockSpec((1, O_pad), lambda i, s: (0, 0))],
                    out_specs=pl.BlockSpec((B, O_pad), lambda i, s: (0, 0))),
                compiler_params=cparams,
            )(seed_arr, x, w, b2d)
        else:
            out = pl.pallas_call(
                kernel, out_shape=out_shape,
                grid_spec=pltpu.PrefetchScalarGridSpec(
                    num_scalar_prefetch=0, grid=(1,),
                    in_specs=[pl.BlockSpec((B, D), lambda i: (0, 0)),
                              pl.BlockSpec((D, O_pad), lambda i: (0, 0)),
                              pl.BlockSpec((1, O_pad), lambda i: (0, 0))],
                    out_specs=pl.BlockSpec((B, O_pad), lambda i: (0, 0))),
                compiler_params=cparams,
            )(x, w, b2d)
        return out[:, :O]

    # ---------------- tiled path ----------------
    # Keep >=2 batch tiles whenever possible so megacore (v7x) shards the parallel axis.
    tm_eff = max(_SUBLANE, min(tm, _round_up(max((B + 1) // 2, _SUBLANE), _SUBLANE)))
    tk_eff = max(_LANE, min(tk, _round_up(D, _LANE)))

    grid_m = pl.cdiv(B, tm_eff)
    grid_k = pl.cdiv(D, tk_eff)
    D_pad = grid_k * tk_eff
    if D_pad != D:
        w = jnp.pad(w, ((0, D_pad - D), (0, 0)))      # W is tiny; safe to pad
    mask_k = D_pad != D

    cdt_item = jnp.dtype(cdt).itemsize
    x_item = jnp.dtype(x.dtype).itemsize
    out_item = jnp.dtype(out_dtype).itemsize

    # Keep the whole (D_pad, O_pad) weight VMEM-resident when its (double-buffered)
    # footprint is modest: it is then DMA'd once instead of once per batch tile.
    w_resident = (2 * D_pad * O_pad * cdt_item) <= (24 << 20)
    acc_in_out = jnp.dtype(out_dtype) == jnp.float32   # accumulate directly in o_ref

    kernel = _make_tiled_kernel(
        threshold=threshold, scale=scale, compute_dtype=cdt, tk=tk_eff, d_total=D,
        w_resident=w_resident, acc_in_out=acc_in_out, mask_k=mask_k)

    scratch = [] if acc_in_out else [pltpu.VMEM((tm_eff, O_pad), jnp.float32)]

    w_block_rows = D_pad if w_resident else tk_eff
    vmem_bytes = (2 * tm_eff * tk_eff * x_item            # double-buffered x tiles
                  + 2 * w_block_rows * O_pad * cdt_item   # weight buffers
                  + 2 * O_pad * 4                         # bias
                  + 2 * tm_eff * O_pad * out_item         # output block buffers
                  + (0 if acc_in_out else tm_eff * O_pad * 4))
    vmem_limit = min(max(int(vmem_bytes * 1.3) + (2 << 20), 16 << 20), 64 << 20)

    cparams = pltpu.CompilerParams(
        dimension_semantics=("parallel", "arbitrary"),
        vmem_limit_bytes=vmem_limit)

    if w_resident:
        w_spec_drop = pl.BlockSpec((D_pad, O_pad), lambda i, k, s: (0, 0))
        w_spec = pl.BlockSpec((D_pad, O_pad), lambda i, k: (0, 0))
    else:
        w_spec_drop = pl.BlockSpec((tk_eff, O_pad), lambda i, k, s: (k, 0))
        w_spec = pl.BlockSpec((tk_eff, O_pad), lambda i, k: (k, 0))

    out_shape = jax.ShapeDtypeStruct((B, O_pad), out_dtype)

    if apply_dropout:
        seed_arr = jnp.asarray([seed], dtype=jnp.int32)
        out = pl.pallas_call(
            kernel, out_shape=out_shape,
            grid_spec=pltpu.PrefetchScalarGridSpec(
                num_scalar_prefetch=1, grid=(grid_m, grid_k),
                in_specs=[pl.BlockSpec((tm_eff, tk_eff), lambda i, k, s: (i, k)),
                          w_spec_drop,
                          pl.BlockSpec((1, O_pad), lambda i, k, s: (0, 0))],
                out_specs=pl.BlockSpec((tm_eff, O_pad), lambda i, k, s: (i, 0)),
                scratch_shapes=scratch),
            compiler_params=cparams,
        )(seed_arr, x, w, b2d)
    else:
        out = pl.pallas_call(
            kernel, out_shape=out_shape,
            grid_spec=pltpu.PrefetchScalarGridSpec(
                num_scalar_prefetch=0, grid=(grid_m, grid_k),
                in_specs=[pl.BlockSpec((tm_eff, tk_eff), lambda i, k: (i, k)),
                          w_spec,
                          pl.BlockSpec((1, O_pad), lambda i, k: (0, 0))],
                out_specs=pl.BlockSpec((tm_eff, O_pad), lambda i, k: (i, 0)),
                scratch_shapes=scratch),
            compiler_params=cparams,
        )(x, w, b2d)

    return out[:, :O]


if __name__ == "__main__":
    # Shapes implied by the module: (batch, input_size) -> (batch, output_size).
    batch, input_size, output_size = 8, 32, 16

    key = jax.random.PRNGKey(0)
    kx, kw, kb, kx2, kx3 = jax.random.split(key, 5)

    x = jax.random.normal(kx, (batch, input_size), dtype=jnp.float32)
    bound = 1.0 / (input_size ** 0.5)
    w_torch = jax.random.uniform(kw, (output_size, input_size),
                                 minval=-bound, maxval=bound, dtype=jnp.float32)
    bias = jax.random.uniform(kb, (output_size,),
                              minval=-bound, maxval=bound, dtype=jnp.float32)
    weight_t = w_torch.T  # (input_size, output_size)

    # 1) Small eval path (dropout != 0 but training=False -> identity, matches torch eval).
    logits = counts_model_forward(x, weight_t, bias, dropout=0.1, training=False)
    jax.block_until_ready(logits)
    ref = x @ weight_t + bias[None, :]
    assert logits.shape == (batch, output_size)
    assert jnp.allclose(logits, ref, atol=5e-2, rtol=5e-2)

    # 2) Small training path with dropout; reference rebuilt from the same stateless mask.
    seed = 123
    p = 0.5
    logits_tr = counts_model_forward(x, weight_t, bias, dropout=p, training=True, seed=seed)
    jax.block_until_ready(logits_tr)
    thr, sc = _dropout_consts(p)
    keep = _keep_mask((batch, input_size), 0, 0, jnp.uint32(seed), thr)
    ref_tr = jnp.where(keep, x * sc, 0.0) @ weight_t + bias[None, :]
    assert logits_tr.shape == (batch, output_size)
    assert bool(jnp.isfinite(logits_tr).all())
    assert jnp.allclose(logits_tr, ref_tr, atol=5e-2, rtol=5e-2)

    # 3) Tiled path, non-aligned shapes (K-tail mask + partial batch tile + resident W).
    B2, D2 = 300, 1500
    bound2 = 1.0 / (D2 ** 0.5)
    x2 = jax.random.normal(kx2, (B2, D2), dtype=jnp.float32)
    kw2, kb2 = jax.random.split(kw, 2)
    w2 = jax.random.uniform(kw2, (D2, output_size),
                            minval=-bound2, maxval=bound2, dtype=jnp.float32)
    b2 = jax.random.uniform(kb2, (output_size,),
                            minval=-bound2, maxval=bound2, dtype=jnp.float32)
    ref2 = jnp.matmul(x2, w2, precision=jax.lax.Precision.HIGHEST) + b2[None, :]
    out2 = counts_model_forward(x2, w2, b2, dropout=0.0, training=False)
    jax.block_until_ready(out2)
    assert out2.shape == (B2, output_size)
    assert jnp.allclose(out2, ref2, atol=5e-2, rtol=5e-2)

    # 4) Tiled dropout path (stateless mask is tiling-independent -> exact reference).
    out2_tr = counts_model_forward(x2, w2, b2, dropout=0.1, training=True, seed=7)
    jax.block_until_ready(out2_tr)
    thr2, sc2 = _dropout_consts(0.1)
    keep2 = _keep_mask((B2, D2), 0, 0, jnp.uint32(7), thr2)
    ref2_tr = jnp.matmul(jnp.where(keep2, x2 * sc2, 0.0), w2,
                         precision=jax.lax.Precision.HIGHEST) + b2[None, :]
    assert jnp.allclose(out2_tr, ref2_tr, atol=5e-2, rtol=5e-2)

    # 5) Aligned tiled path, f32 and bf16 compute (f32 accumulation / bias either way).
    B3, D3 = 320, 2048
    bound3 = 1.0 / (D3 ** 0.5)
    x3 = jax.random.normal(kx3, (B3, D3), dtype=jnp.float32)
    kw3, kb3 = jax.random.split(kw2, 2)
    w3 = jax.random.uniform(kw3, (D3, output_size),
                            minval=-bound3, maxval=bound3, dtype=jnp.float32)
    b3 = jax.random.uniform(kb3, (output_size,),
                            minval=-bound3, maxval=bound3, dtype=jnp.float32)
    ref3 = jnp.matmul(x3, w3, precision=jax.lax.Precision.HIGHEST) + b3[None, :]
    out3 = counts_model_forward(x3, w3, b3, dropout=0.0, training=False)
    out3_bf = counts_model_forward(x3, w3, b3, dropout=0.0, training=False,
                                   compute_dtype=jnp.bfloat16)
    jax.block_until_ready((out3, out3_bf))
    assert out3.shape == (B3, output_size)
    assert out3_bf.dtype == jnp.float32
    assert jnp.allclose(out3, ref3, atol=5e-2, rtol=5e-2)
    assert jnp.allclose(out3_bf, ref3, atol=1e-1, rtol=1e-1)

    print("KERNEL_OK")
</pallas_src>

<mosaic_0001>
module attributes {stable_mosaic.version = 11 : i64} {
  func.func @kernel(%arg0: i32, %arg1: memref<8x32xf32, #tpu.memory_space<vmem>>, %arg2: memref<32x128xf32, #tpu.memory_space<vmem>>, %arg3: memref<1x128xf32, #tpu.memory_space<vmem>>, %arg4: memref<8x128xf32, #tpu.memory_space<vmem>>) attributes {dimension_semantics = [#tpu.dimension_semantics<arbitrary>], iteration_bounds = array<i64: 1>, scalar_prefetch = 0 : i64, scratch_operands = 0 : i64, tpu.core_type = #tpu.core_type<tc>, window_params = [{pipeline_mode = #tpu.pipeline_mode<synchronous>, transform_indices = @transform_0, window_bounds = array<i64: 8, 32>}, {pipeline_mode = #tpu.pipeline_mode<synchronous>, transform_indices = @transform_1, window_bounds = array<i64: 32, 128>}, {pipeline_mode = #tpu.pipeline_mode<synchronous>, transform_indices = @transform_2, window_bounds = array<i64: 1, 128>}, {pipeline_mode = #tpu.pipeline_mode<synchronous>, transform_indices = @transform_3, window_bounds = array<i64: 8, 128>}]} {
    %c0 = arith.constant 0 : index
    %c0_0 = arith.constant 0 : index
    %0 = vector.load %arg1[%c0, %c0_0] : memref<8x32xf32, #tpu.memory_space<vmem>>, vector<8x32xf32>
    %c0_1 = arith.constant 0 : index
    %c0_2 = arith.constant 0 : index
    %1 = vector.load %arg2[%c0_1, %c0_2] : memref<32x128xf32, #tpu.memory_space<vmem>>, vector<32x128xf32>
    %cst = arith.constant dense<0.000000e+00> : vector<8x128xf32>
    %2 = tpu.matmul %0, %1, %cst {dimension_numbers = #tpu.dot_dimension_numbers<[1], [0], [0], [1], [0, 0, 1, 1], [], []>} : vector<8x32xf32>, vector<32x128xf32>, vector<8x128xf32> -> vector<8x128xf32>
    %c0_3 = arith.constant 0 : index
    %c0_4 = arith.constant 0 : index
    %3 = vector.load %arg3[%c0_3, %c0_4] : memref<1x128xf32, #tpu.memory_space<vmem>>, vector<1x128xf32>
    %4 = vector.broadcast %3 : vector<1x128xf32> to vector<8x128xf32>
    %5 = arith.addf %2, %4 : vector<8x128xf32>
    %c0_5 = arith.constant 0 : index
    %c0_6 = arith.constant 0 : index
    %6 = vector.load %arg4[%c0_5, %c0_6] : memref<8x128xf32, #tpu.memory_space<vmem>>, vector<8x128xf32>
    tpu.vector_store %arg4[%c0_5, %c0_6], %5 {strides = array<i32>} : memref<8x128xf32, #tpu.memory_space<vmem>>, vector<8x128xf32>,
    return
  }
  func.func @transform_0(%arg0: i32) -> (i32, i32) {
    %c0_i32 = arith.constant 0 : i32
    %c0_i32_0 = arith.constant 0 : i32
    %c0_i32_1 = arith.constant 0 : i32
    return %c0_i32, %c0_i32_0 : i32, i32
  }
  func.func @transform_1(%arg0: i32) -> (i32, i32) {
    %c0_i32 = arith.constant 0 : i32
    %c0_i32_0 = arith.constant 0 : i32
    %c0_i32_1 = arith.constant 0 : i32
    return %c0_i32, %c0_i32_0 : i32, i32
  }
  func.func @transform_2(%arg0: i32) -> (i32, i32) {
    %c0_i32 = arith.constant 0 : i32
    %c0_i32_0 = arith.constant 0 : i32
    %c0_i32_1 = arith.constant 0 : i32
    return %c0_i32, %c0_i32_0 : i32, i32
  }
  func.func @transform_3(%arg0: i32) -> (i32, i32) {
    %c0_i32 = arith.constant 0 : i32
    %c0_i32_0 = arith.constant 0 : i32
    %c0_i32_1 = arith.constant 0 : i32
    return %c0_i32, %c0_i32_0 : i32, i32
  }
}

</mosaic_0001>

<bundles_post_ra>
// kernel: tpu_custom_call.1
= control target key start
LH: loop header
LB: loop body
LE: loop exit
PB: predicated region body
PF: predicated region fallthrough
CT: control target
= control target key end

     0   :  { %8 = vsyncpa [#allocation3], 0  ;;  %s322_s0 = inlined_call_operand.hbm [shape: f32[8,32], index: 0, kind: input, shape index: {}]   ;;  %s323_s1 = inlined_call_operand.hbm [shape: f32[32,128], index: 1, kind: input, shape index: {}]   ;;  %s324_s2 = inlined_call_operand.vmem [shape: f32[1,128], index: 2, kind: input, shape index: {}]   ;;  %s325_s3 = inlined_call_operand.hbm [shape: f32[8,128], index: 3, kind: output, shape index: {}]  }
   0x1   :  { %9 = vsyncpa [#allocation6], 0 }
   0x2   :  { %10 = vsyncpa [#allocation4], 0  ;;  %s248_s12 = smov [#allocation2]   ;;  %s249_s14 = smov [#allocation5]  }
   0x3   :  { %s17_s13 = sshll.u32 %s248_s12, 4  ;;  %s26_s15 = sshll.u32 %s249_s14, 4  ;;  %s18_s13 = int_to_ptr.vmem [resolvable:$true] %s17_s13  ;;  %s276_s15 = int_to_ptr.vmem [resolvable:$true] %s26_s15 }
   0x4   :  { %s176_s18 = scalar_lea.hbm %s322_s0, 128 }
   0x5   :  { %p177_p0 = scmp.ne.s32.totalorder %s322_s0, %s176_s18  ;;  %p180_p1 = scmp.lt.u32.totalorder %s176_s18, %s322_s0 }
   0x7   :  { %p182_p2 = pnand %p180_p1, %p177_p0 }
   0x9   :  { %185 = shalt.err (!%p182_p2)
}
   0xa   :  { %s186_s23 = scalar_lea.vmem %s18_s13, 128  ;;  %p191_p4 = scmp.lt.s32.totalorder %s18_s13, %s18_s13 }
   0xb   :  { %p187_p3 = scmp.ne.s32.totalorder %s18_s13, %s186_s23  ;;  %p192_p5 = scmp.lt.s32.totalorder %s186_s23, %s186_s23 }
   0xd   :  { %p193_p6 = por %p192_p5, %p191_p4 }
   0xf   :  { %p194_p7 = pnand %p193_p6, %p187_p3 }
  0x11   :  { %197 = shalt.err (!%p194_p7)
}
  0x12   :  { %20 = dma.hbm_to_vmem [thread:$0]  %s322_s0, 128, %s18_s13, [#allocation3]  }
  0x13   :  { %s198_s28 = scalar_lea.hbm %s323_s1, 512 }
  0x14   :  { %p199_p8 = scmp.ne.s32.totalorder %s323_s1, %s198_s28  ;;  %p202_p9 = scmp.lt.u32.totalorder %s198_s28, %s323_s1 }
  0x16   :  { %p204_p10 = pnand %p202_p9, %p199_p8 }
  0x18   :  { %207 = shalt.err (!%p204_p10)
}
  0x19   :  { %s208_s6 = scalar_lea.vmem %s276_s15, 512  ;;  %p213_p12 = scmp.lt.s32.totalorder %s276_s15, %s276_s15 }
  0x1a   :  { %p209_p11 = scmp.ne.s32.totalorder %s276_s15, %s208_s6  ;;  %p214_p13 = scmp.lt.s32.totalorder %s208_s6, %s208_s6 }
  0x1c   :  { %p215_p0 = por %p214_p13, %p213_p12 }
  0x1e   :  { %p216_p1 = pnand %p215_p0, %p209_p11 }
  0x20   :  { %219 = shalt.err (!%p216_p1)
}
  0x21   :  { %s250_s0 = smov 128   ;;  %s251_s7 = smov 8  }
  0x22   :  { %32 = dma.hbm_to_vmem [thread:$0]  %s323_s1, 512, %s276_s15, [#allocation6], %s250_s0, %s250_s0, %s251_s7  }
  0x23   :  { %242 = dma.done.wait [#allocation3], 128  }
  0x24   :  { %243 = vsyncadd [#allocation3], 4294967168 }
  0x25   :  { %244 = dma.done.wait [#allocation6], 512  }
  0x26   :  { %245 = vsyncadd [#allocation6], 4294966784  ;;  %v252_v0 = vmov 0.0|0.0   ;;  %vm253_vm0 = vmmov 0   ;;  %v254_v1 = vmov 0.0   ;;  %v42_v2 = vld [vmem:[#allocation5] sm:$0xff] }
  0x27   :  { %162 = vmatprep.subr.bf16.mxu0 %v252_v0  ;;  %159 = vmatprep.mubr.msk.f32.mxu0 %vm253_vm0, %v254_v1  ;;  %v43_v3 = vld [vmem:[#allocation5 + $0x8] sm:$0xff]  ;;  %v44_v4 = vld [vmem:[#allocation5 + $0x10] sm:$0xff]  ;;  %v45_v6 = vld [vmem:[#allocation5 + $0x18] sm:$0xff]  ;;  %vm53_vm1 = vcmask 261120   ;;  %s255_s11 = smov [#allocation7]  }
  0x28   :  { %v163_v5 = vpack.c.bf16 %v43_v3, %v42_v2  ;;  %v166_v7 = vpack.c.bf16 %v45_v6, %v44_v4  ;;  %v41_v8 = vld [vmem:[#allocation2] sm:$0xff]  ;;  %s134_s12 = sshll.u32 %s255_s11, 4  ;;  %s135_s12 = int_to_ptr.vmem [resolvable:$true] %s134_s12 }
  0x29   :  { %v144_v9 = vld [vmem:[%s324_s2] ss:$0 sm:$0xff]  ;;  %s220_s13 = scalar_lea.vmem %s135_s12, 128  ;;  %p225_p3 = scmp.lt.s32.totalorder %s135_s12, %s135_s12 }
  0x2a   :  { %164 = vmatpush3.bf16.msra.mxu0 %v163_v5  ;;  %p221_p2 = scmp.ne.s32.totalorder %s135_s12, %s220_s13  ;;  %p226_p4 = scmp.lt.s32.totalorder %s220_s13, %s220_s13 }
  0x2b   :  { %165 = vmatprep.subr.bf16.mxu0 %v252_v0 }
  0x2c   :  { %p227_p5 = por %p226_p4, %p225_p3 }
  0x2e   :  { %167 = vmatpush3.bf16.msra.mxu0 %v166_v7  ;;  %p228_p6 = pnand %p227_p5, %p221_p2 }
  0x31   :  { %160 = vmatmul.mubr.msk.f32.vlgmr.msra.gmra.mrb[0].mxu0 %vm53_vm1, %v41_v8 }
 0x104   :  { %v123_v10 = vpop.f32.mrb[0].mxu0 }
 0x105   :  { %v124_v11 = vadd.f32 %v144_v9, %v123_v10  ;;  %v161_v12 = vpop.f32.mrb[1].mxu0 }
 0x107   :  { %127 = vst [vmem:[#allocation7] sm:$0xff] %v124_v11 }
 0x108   :  { %231 = shalt.err (!%p228_p6)
}
 0x109   :  { %s232_s16 = scalar_lea.hbm %s325_s3, 128 }
 0x10a   :  { %p233_p7 = scmp.ne.s32.totalorder %s325_s3, %s232_s16  ;;  %p236_p8 = scmp.lt.u32.totalorder %s232_s16, %s325_s3 }
 0x10c   :  { %p238_p9 = pnand %p236_p8, %p233_p7 }
 0x10e   :  { %241 = shalt.err (!%p238_p9)
}
 0x10f   :  { %137 = dma.vmem_to_hbm [thread:$0]  %s135_s12, 128, %s325_s3, [#allocation4]  }
 0x110   :  { %246 = dma.done.wait [#allocation4], 128  }
 0x111   :  { %247 = vsyncadd [#allocation4], 4294967168 }
 0x112   :  { %141 = vsyncpa [#allocation3], 1 }
 0x113   :  { %142 = vsyncpa [#allocation6], 1 }
 0x114   :  { %143 = vsyncpa [#allocation4], 1 }

</bundles_post_ra>
